<compile_context>
chip_gen: v7x
topology: tpu7x:2x2x1
jax: 0.10.0
libtpu: 0.0.40
codegen_flags: <defaults>
</compile_context>

<pallas_src>
import jax
import jax.numpy as jnp
from jax.experimental import pallas as pl
from jax.experimental.pallas import tpu as pltpu


# ----------------------------------------------------------------------------
# Pallas kernel: one batch element per grid step.
# ----------------------------------------------------------------------------

def _context_block_kernel(x_ref, wm_ref, bm_ref, w1_ref, b1_ref, g_ref, be_ref,
                          w2_ref, b2_ref, o_ref):
    x = x_ref[0]                                                    # (C, HW) f32

    # ---- spatial attention pooling: conv_mask (1x1, C->1) + softmax over HW ----
    # VPU multiply + cross-sublane (XLU) reduce; avoids a lane-sparse MXU matvec.
    logits = jnp.sum(x * wm_ref[...], axis=0, keepdims=True) + bm_ref[...]  # (1, HW)
    m = jnp.max(logits, axis=1, keepdims=True)
    e = jnp.exp(logits - m)
    denom = jnp.sum(e, axis=1, keepdims=True)
    attn = e * pl.reciprocal(denom, approx=True)                    # (1, HW)

    # context[c] = sum_hw x[c, hw] * attn[hw]   (cross-lane reduce per channel)
    context = jnp.sum(x * attn, axis=1, keepdims=True)              # (C, 1)

    # ---- channel_add_conv: 1x1 conv -> LayerNorm([C/r,1,1]) -> ReLU -> 1x1 conv ----
    t = jnp.dot(w1_ref[...], context,
                preferred_element_type=jnp.float32) + b1_ref[...]   # (Cr, 1)
    mu = jnp.mean(t, axis=0, keepdims=True)
    var = jnp.mean((t - mu) ** 2, axis=0, keepdims=True)
    t = (t - mu) * jax.lax.rsqrt(var + 1e-5) * g_ref[...] + be_ref[...]
    t = jnp.maximum(t, 0.0)
    add = jnp.dot(w2_ref[...], t,
                  preferred_element_type=jnp.float32) + b2_ref[...]  # (C, 1)

    # ---- fusion: out = x + channel_add_term (broadcast over the HW lanes) ----
    o_ref[0] = x + add


# ----------------------------------------------------------------------------
# Wrapper
# ----------------------------------------------------------------------------

def context_block_2d(x_nchw, params):
    """x_nchw: (B, C, H, W) float32 -> (B, C, H, W) float32."""
    B, C, H, W = x_nchw.shape
    HW = H * W
    Cr = params["w1"].shape[0]
    xf = x_nchw.reshape(B, C, HW)          # free (contiguous) reshape, no transpose

    out = pl.pallas_call(
        _context_block_kernel,
        out_shape=jax.ShapeDtypeStruct((B, C, HW), jnp.float32),
        grid=(B,),
        in_specs=[
            pl.BlockSpec((1, C, HW), lambda b: (b, 0, 0)),   # x  (per-batch slab)
            pl.BlockSpec((C, 1),  lambda b: (0, 0)),         # conv_mask weight
            pl.BlockSpec((1, 1),  lambda b: (0, 0)),         # conv_mask bias
            pl.BlockSpec((Cr, C), lambda b: (0, 0)),         # channel_add conv1 W
            pl.BlockSpec((Cr, 1), lambda b: (0, 0)),         # channel_add conv1 b
            pl.BlockSpec((Cr, 1), lambda b: (0, 0)),         # LayerNorm gamma
            pl.BlockSpec((Cr, 1), lambda b: (0, 0)),         # LayerNorm beta
            pl.BlockSpec((C, Cr), lambda b: (0, 0)),         # channel_add conv2 W
            pl.BlockSpec((C, 1),  lambda b: (0, 0)),         # channel_add conv2 b
        ],
        out_specs=pl.BlockSpec((1, C, HW), lambda b: (b, 0, 0)),
        compiler_params=pltpu.CompilerParams(
            dimension_semantics=("parallel",),
            vmem_limit_bytes=48 * 1024 * 1024,   # < v7x's 64 MiB physical VMEM
        ),
    )(xf, params["wm"], params["bm"], params["w1"], params["b1"],
      params["g"], params["be"], params["w2"], params["b2"])
    return out.reshape(B, C, H, W)


# ----------------------------------------------------------------------------
# Deterministic parameter construction (forward semantics do not depend on the
# reference's zero-init of the last conv; random values exercise the full path).
# ----------------------------------------------------------------------------

def make_params(key, C, ratio=8):
    Cr = C // ratio
    ks = jax.random.split(key, 8)
    return {
        "wm": jax.random.normal(ks[0], (C, 1), jnp.float32) * (1.0 / C) ** 0.5,
        "bm": 0.05 * jax.random.normal(ks[1], (1, 1), jnp.float32),
        "w1": jax.random.normal(ks[2], (Cr, C), jnp.float32) * (2.0 / C) ** 0.5,
        "b1": 0.05 * jax.random.normal(ks[3], (Cr, 1), jnp.float32),
        "g":  1.0 + 0.05 * jax.random.normal(ks[4], (Cr, 1), jnp.float32),
        "be": 0.05 * jax.random.normal(ks[5], (Cr, 1), jnp.float32),
        "w2": jax.random.normal(ks[6], (C, Cr), jnp.float32) * (2.0 / Cr) ** 0.5,
        "b2": 0.05 * jax.random.normal(ks[7], (C, 1), jnp.float32),
    }


# ----------------------------------------------------------------------------
# Pure-JAX reference (mirrors the PyTorch forward) for a correctness check.
# ----------------------------------------------------------------------------

def context_block_ref(x_nchw, params):
    B, C, H, W = x_nchw.shape
    xf = x_nchw.reshape(B, C, H * W)
    logits = jnp.einsum("bcs,co->bos", xf, params["wm"]) + params["bm"][0, 0]
    attn = jax.nn.softmax(logits, axis=2)                           # (B, 1, HW)
    context = jnp.einsum("bcs,bos->bco", xf, attn)                  # (B, C, 1)
    t = jnp.einsum("rc,bco->bro", params["w1"], context) + params["b1"][None]
    mu = jnp.mean(t, axis=1, keepdims=True)
    var = jnp.mean((t - mu) ** 2, axis=1, keepdims=True)
    t = (t - mu) / jnp.sqrt(var + 1e-5) * params["g"][None] + params["be"][None]
    t = jnp.maximum(t, 0.0)
    add = jnp.einsum("cr,bro->bco", params["w2"], t) + params["b2"][None]
    return (xf + add).reshape(B, C, H, W)


if __name__ == "__main__":
    B, C, H, W = 2, 64, 16, 16          # inplanes = planes = 64, ratio = 8 -> Cr = 8
    key = jax.random.PRNGKey(0)
    kx, kp = jax.random.split(key)
    x = jax.random.normal(kx, (B, C, H, W), jnp.float32)   # NCHW, like PyTorch
    params = make_params(kp, C, ratio=8)

    fwd = jax.jit(lambda inp: context_block_2d(inp, params))
    out = fwd(x)
    jax.block_until_ready(out)

    ref = context_block_ref(x, params)
    assert out.shape == (B, C, H, W), out.shape
    assert out.dtype == jnp.float32
    assert bool(jnp.all(jnp.isfinite(out)))
    max_err = float(jnp.max(jnp.abs(out - ref)))
    assert max_err < 1e-2, f"max abs error vs reference: {max_err}"
    print("KERNEL_OK")
</pallas_src>

<mosaic_0001>
module attributes {stable_mosaic.version = 11 : i64} {
  func.func @_context_block_kernel(%arg0: i32, %arg1: memref<1x64x256xf32, #tpu.memory_space<vmem>>, %arg2: memref<64x1xf32, #tpu.memory_space<vmem>>, %arg3: memref<1x1xf32, #tpu.memory_space<vmem>>, %arg4: memref<8x64xf32, #tpu.memory_space<vmem>>, %arg5: memref<8x1xf32, #tpu.memory_space<vmem>>, %arg6: memref<8x1xf32, #tpu.memory_space<vmem>>, %arg7: memref<8x1xf32, #tpu.memory_space<vmem>>, %arg8: memref<64x8xf32, #tpu.memory_space<vmem>>, %arg9: memref<64x1xf32, #tpu.memory_space<vmem>>, %arg10: memref<1x64x256xf32, #tpu.memory_space<vmem>>) attributes {dimension_semantics = [#tpu.dimension_semantics<parallel>], iteration_bounds = array<i64: 2>, scalar_prefetch = 0 : i64, scratch_operands = 0 : i64, tpu.core_type = #tpu.core_type<tc>, window_params = [{transform_indices = @transform_0, window_bounds = array<i64: 1, 64, 256>}, {pipeline_mode = #tpu.pipeline_mode<synchronous>, transform_indices = @transform_1, window_bounds = array<i64: 64, 1>}, {pipeline_mode = #tpu.pipeline_mode<synchronous>, transform_indices = @transform_2, window_bounds = array<i64: 1, 1>}, {pipeline_mode = #tpu.pipeline_mode<synchronous>, transform_indices = @transform_3, window_bounds = array<i64: 8, 64>}, {pipeline_mode = #tpu.pipeline_mode<synchronous>, transform_indices = @transform_4, window_bounds = array<i64: 8, 1>}, {pipeline_mode = #tpu.pipeline_mode<synchronous>, transform_indices = @transform_5, window_bounds = array<i64: 8, 1>}, {pipeline_mode = #tpu.pipeline_mode<synchronous>, transform_indices = @transform_6, window_bounds = array<i64: 8, 1>}, {pipeline_mode = #tpu.pipeline_mode<synchronous>, transform_indices = @transform_7, window_bounds = array<i64: 64, 8>}, {pipeline_mode = #tpu.pipeline_mode<synchronous>, transform_indices = @transform_8, window_bounds = array<i64: 64, 1>}, {transform_indices = @transform_9, window_bounds = array<i64: 1, 64, 256>}]} {
    %c0 = arith.constant 0 : index
    %c0_0 = arith.constant 0 : index
    %c0_1 = arith.constant 0 : index
    %0 = vector.load %arg1[%c0, %c0_0, %c0_1] : memref<1x64x256xf32, #tpu.memory_space<vmem>>, vector<1x64x256xf32>
    %1 = vector.shape_cast %0 : vector<1x64x256xf32> to vector<64x256xf32>
    %c0_2 = arith.constant 0 : index
    %c0_3 = arith.constant 0 : index
    %2 = vector.load %arg2[%c0_2, %c0_3] : memref<64x1xf32, #tpu.memory_space<vmem>>, vector<64x1xf32>
    %3 = vector.broadcast %2 : vector<64x1xf32> to vector<64x256xf32>
    %4 = arith.mulf %1, %3 : vector<64x256xf32>
    %cst = arith.constant dense<0.000000e+00> : vector<256xf32>
    %5 = vector.multi_reduction <add>, %4, %cst [0] : vector<64x256xf32> to vector<256xf32>
    %6 = vector.shape_cast %5 : vector<256xf32> to vector<1x256xf32>
    %c0_4 = arith.constant 0 : index
    %c0_5 = arith.constant 0 : index
    %7 = vector.load %arg3[%c0_4, %c0_5] : memref<1x1xf32, #tpu.memory_space<vmem>>, vector<1x1xf32>
    %8 = vector.broadcast %7 : vector<1x1xf32> to vector<1x256xf32>
    %9 = arith.addf %6, %8 : vector<1x256xf32>
    %cst_6 = arith.constant dense<0xFF800000> : vector<1xf32>
    %10 = vector.multi_reduction <maximumf>, %9, %cst_6 [1] : vector<1x256xf32> to vector<1xf32>
    %11 = vector.shape_cast %10 : vector<1xf32> to vector<1x1xf32>
    %12 = vector.broadcast %11 : vector<1x1xf32> to vector<1x256xf32>
    %13 = arith.subf %9, %12 : vector<1x256xf32>
    %14 = math.exp %13 : vector<1x256xf32>
    %cst_7 = arith.constant dense<0.000000e+00> : vector<1xf32>
    %15 = vector.multi_reduction <add>, %14, %cst_7 [1] : vector<1x256xf32> to vector<1xf32>
    %16 = vector.shape_cast %15 : vector<1xf32> to vector<1x1xf32>
    %17 = tpu.reciprocal %16 {approx = true} : vector<1x1xf32> -> vector<1x1xf32>
    %18 = vector.broadcast %17 : vector<1x1xf32> to vector<1x256xf32>
    %19 = arith.mulf %14, %18 : vector<1x256xf32>
    %20 = vector.broadcast %19 : vector<1x256xf32> to vector<64x256xf32>
    %21 = arith.mulf %1, %20 : vector<64x256xf32>
    %cst_8 = arith.constant dense<0.000000e+00> : vector<64xf32>
    %22 = vector.multi_reduction <add>, %21, %cst_8 [1] : vector<64x256xf32> to vector<64xf32>
    %23 = vector.shape_cast %22 : vector<64xf32> to vector<64x1xf32>
    %c0_9 = arith.constant 0 : index
    %c0_10 = arith.constant 0 : index
    %24 = vector.load %arg4[%c0_9, %c0_10] : memref<8x64xf32, #tpu.memory_space<vmem>>, vector<8x64xf32>
    %cst_11 = arith.constant dense<0.000000e+00> : vector<8x1xf32>
    %25 = tpu.matmul %24, %23, %cst_11 {dimension_numbers = #tpu.dot_dimension_numbers<[1], [0], [0], [1], [0, 0, 1, 1], [], []>} : vector<8x64xf32>, vector<64x1xf32>, vector<8x1xf32> -> vector<8x1xf32>
    %c0_12 = arith.constant 0 : index
    %c0_13 = arith.constant 0 : index
    %26 = vector.load %arg5[%c0_12, %c0_13] : memref<8x1xf32, #tpu.memory_space<vmem>>, vector<8x1xf32>
    %27 = arith.addf %25, %26 : vector<8x1xf32>
    %cst_14 = arith.constant dense<0.000000e+00> : vector<1xf32>
    %28 = vector.multi_reduction <add>, %27, %cst_14 [0] : vector<8x1xf32> to vector<1xf32>
    %29 = vector.shape_cast %28 : vector<1xf32> to vector<1x1xf32>
    %cst_15 = arith.constant 8.000000e+00 : f32
    %30 = vector.broadcast %cst_15 : f32 to vector<1x1xf32>
    %31 = arith.divf %29, %30 : vector<1x1xf32>
    %32 = vector.broadcast %31 : vector<1x1xf32> to vector<8x1xf32>
    %33 = arith.subf %27, %32 : vector<8x1xf32>
    %34 = arith.mulf %33, %33 : vector<8x1xf32>
    %cst_16 = arith.constant dense<0.000000e+00> : vector<1xf32>
    %35 = vector.multi_reduction <add>, %34, %cst_16 [0] : vector<8x1xf32> to vector<1xf32>
    %36 = vector.shape_cast %35 : vector<1xf32> to vector<1x1xf32>
    %cst_17 = arith.constant 8.000000e+00 : f32
    %37 = vector.broadcast %cst_17 : f32 to vector<1x1xf32>
    %38 = arith.divf %36, %37 : vector<1x1xf32>
    %39 = vector.broadcast %31 : vector<1x1xf32> to vector<8x1xf32>
    %40 = arith.subf %27, %39 : vector<8x1xf32>
    %cst_18 = arith.constant 9.99999974E-6 : f32
    %41 = vector.broadcast %cst_18 : f32 to vector<1x1xf32>
    %42 = arith.addf %38, %41 : vector<1x1xf32>
    %43 = math.rsqrt %42 : vector<1x1xf32>
    %44 = vector.broadcast %43 : vector<1x1xf32> to vector<8x1xf32>
    %45 = arith.mulf %40, %44 : vector<8x1xf32>
    %c0_19 = arith.constant 0 : index
    %c0_20 = arith.constant 0 : index
    %46 = vector.load %arg6[%c0_19, %c0_20] : memref<8x1xf32, #tpu.memory_space<vmem>>, vector<8x1xf32>
    %47 = arith.mulf %45, %46 : vector<8x1xf32>
    %c0_21 = arith.constant 0 : index
    %c0_22 = arith.constant 0 : index
    %48 = vector.load %arg7[%c0_21, %c0_22] : memref<8x1xf32, #tpu.memory_space<vmem>>, vector<8x1xf32>
    %49 = arith.addf %47, %48 : vector<8x1xf32>
    %cst_23 = arith.constant 0.000000e+00 : f32
    %50 = vector.broadcast %cst_23 : f32 to vector<8x1xf32>
    %51 = arith.maximumf %49, %50 : vector<8x1xf32>
    %c0_24 = arith.constant 0 : index
    %c0_25 = arith.constant 0 : index
    %52 = vector.load %arg8[%c0_24, %c0_25] : memref<64x8xf32, #tpu.memory_space<vmem>>, vector<64x8xf32>
    %cst_26 = arith.constant dense<0.000000e+00> : vector<64x1xf32>
    %53 = tpu.matmul %52, %51, %cst_26 {dimension_numbers = #tpu.dot_dimension_numbers<[1], [0], [0], [1], [0, 0, 1, 1], [], []>} : vector<64x8xf32>, vector<8x1xf32>, vector<64x1xf32> -> vector<64x1xf32>
    %c0_27 = arith.constant 0 : index
    %c0_28 = arith.constant 0 : index
    %54 = vector.load %arg9[%c0_27, %c0_28] : memref<64x1xf32, #tpu.memory_space<vmem>>, vector<64x1xf32>
    %55 = arith.addf %53, %54 : vector<64x1xf32>
    %56 = vector.broadcast %55 : vector<64x1xf32> to vector<64x256xf32>
    %57 = arith.addf %1, %56 : vector<64x256xf32>
    %c0_29 = arith.constant 0 : index
    %c0_30 = arith.constant 0 : index
    %c0_31 = arith.constant 0 : index
    %58 = vector.load %arg10[%c0_29, %c0_30, %c0_31] : memref<1x64x256xf32, #tpu.memory_space<vmem>>, vector<1x64x256xf32>
    %59 = vector.shape_cast %58 : vector<1x64x256xf32> to vector<64x256xf32>
    %60 = vector.shape_cast %57 : vector<64x256xf32> to vector<1x64x256xf32>
    tpu.vector_store %arg10[%c0_29, %c0_30, %c0_31], %60 {strides = array<i32>} : memref<1x64x256xf32, #tpu.memory_space<vmem>>, vector<1x64x256xf32>,
    return
  }
  func.func @transform_0(%arg0: i32) -> (i32, i32, i32) {
    %c0_i32 = arith.constant 0 : i32
    %c0_i32_0 = arith.constant 0 : i32
    %c0_i32_1 = arith.constant 0 : i32
    return %arg0, %c0_i32, %c0_i32_0 : i32, i32, i32
  }
  func.func @transform_1(%arg0: i32) -> (i32, i32) {
    %c0_i32 = arith.constant 0 : i32
    %c0_i32_0 = arith.constant 0 : i32
    %c0_i32_1 = arith.constant 0 : i32
    return %c0_i32, %c0_i32_0 : i32, i32
  }
  func.func @transform_2(%arg0: i32) -> (i32, i32) {
    %c0_i32 = arith.constant 0 : i32
    %c0_i32_0 = arith.constant 0 : i32
    %c0_i32_1 = arith.constant 0 : i32
    return %c0_i32, %c0_i32_0 : i32, i32
  }
  func.func @transform_3(%arg0: i32) -> (i32, i32) {
    %c0_i32 = arith.constant 0 : i32
    %c0_i32_0 = arith.constant 0 : i32
    %c0_i32_1 = arith.constant 0 : i32
    return %c0_i32, %c0_i32_0 : i32, i32
  }
  func.func @transform_4(%arg0: i32) -> (i32, i32) {
    %c0_i32 = arith.constant 0 : i32
    %c0_i32_0 = arith.constant 0 : i32
    %c0_i32_1 = arith.constant 0 : i32
    return %c0_i32, %c0_i32_0 : i32, i32
  }
  func.func @transform_5(%arg0: i32) -> (i32, i32) {
    %c0_i32 = arith.constant 0 : i32
    %c0_i32_0 = arith.constant 0 : i32
    %c0_i32_1 = arith.constant 0 : i32
    return %c0_i32, %c0_i32_0 : i32, i32
  }
  func.func @transform_6(%arg0: i32) -> (i32, i32) {
    %c0_i32 = arith.constant 0 : i32
    %c0_i32_0 = arith.constant 0 : i32
    %c0_i32_1 = arith.constant 0 : i32
    return %c0_i32, %c0_i32_0 : i32, i32
  }
  func.func @transform_7(%arg0: i32) -> (i32, i32) {
    %c0_i32 = arith.constant 0 : i32
    %c0_i32_0 = arith.constant 0 : i32
    %c0_i32_1 = arith.constant 0 : i32
    return %c0_i32, %c0_i32_0 : i32, i32
  }
  func.func @transform_8(%arg0: i32) -> (i32, i32) {
    %c0_i32 = arith.constant 0 : i32
    %c0_i32_0 = arith.constant 0 : i32
    %c0_i32_1 = arith.constant 0 : i32
    return %c0_i32, %c0_i32_0 : i32, i32
  }
  func.func @transform_9(%arg0: i32) -> (i32, i32, i32) {
    %c0_i32 = arith.constant 0 : i32
    %c0_i32_0 = arith.constant 0 : i32
    %c0_i32_1 = arith.constant 0 : i32
    return %arg0, %c0_i32, %c0_i32_0 : i32, i32, i32
  }
}

</mosaic_0001>

<bundles_post_ra>
// kernel: _lambda_.1
= control target key start
LH: loop header
LB: loop body
LE: loop exit
PB: predicated region body
PF: predicated region fallthrough
CT: control target
= control target key end

     0   :  { %s1057_s11 = smov 0   ;;  %s1289_s0 = inlined_call_operand.vmem [shape: f32[2,64,256], index: 0, kind: input, shape index: {}]   ;;  %s1290_s1 = inlined_call_operand.vmem [shape: f32[64,1], index: 1, kind: input, shape index: {}]   ;;  %s1291_s2 = inlined_call_operand.<no memory space> [shape: f32[1,1], index: 2, kind: input, shape index: {}]   ;;  %s1292_s3 = inlined_call_operand.vmem [shape: f32[8,64], index: 3, kind: input, shape index: {}]   ;;  %s1293_s4 = inlined_call_operand.vmem [shape: f32[8,1], index: 4, kind: input, shape index: {}]   ;;  %s1294_s5 = inlined_call_operand.vmem [shape: f32[8,1], index: 5, kind: input, shape index: {}]   ;;  %s1295_s6 = inlined_call_operand.vmem [shape: f32[8,1], index: 6, kind: input, shape index: {}]   ;;  %s1296_s7 = inlined_call_operand.vmem [shape: f32[64,8], index: 7, kind: input, shape index: {}]   ;;  %s1297_s8 = inlined_call_operand.vmem [shape: f32[64,1], index: 8, kind: input, shape index: {}]   ;;  %s1298_s9 = inlined_call_operand.vmem [shape: f32[2,64,256], index: 9, kind: output, shape index: {}]  }
   0x1   :  { %v14_v0 = vstv %s1291_s2 }
   0x2   :  { %15 = vst [vmem:[#allocation2] sm:$0x1] %v14_v0 }
   0x3 LB: > { %s885_s12 = sadd.s32 4294967295, %s998_s11   ;;  %p889_p0 = scmp.ge.s32.totalorder %s998_s11, 1  ;;  %s998_s11 = sphi %s1057_s11, %s21_s11  }
   0x4   : > { %p289_p1 = scmp.lt.s32.totalorder %s998_s11, 3 }
   0x6   : > { %p290_p2 = pnand %p889_p0, %p289_p1 }
   0x7   : > { %v353_v1 = vld [vmem:[%s1290_s1 + $0x10] sm:$0xff] (!%p290_p2)  ;;  %v351_v2 = vld [vmem:[%s1290_s1] sm:$0xff] (!%p290_p2)  ;;  %v1000_v3 = vmov (!%p290_p2), 0   ;;  %v354_v4 = vld [vmem:[%s1290_s1 + $0x18] sm:$0xff] (!%p290_p2)  ;;  %p325_p3 = scmp.lt.s32.totalorder (!%p290_p2), %s885_s12, 1  ;;  %vm1002_vm0 = vmmov (!%p290_p2), 0  }
   0x8   : > { %293 = sbr.rel (%p290_p2) target bundleno = 1281 (0x501), region = 56  ;;  %983 = vset.pattern.permute.xlu1 (!%p290_p2), %v1000_v3  ;;  %982 = vset.pattern.permute.xlu0 (!%p290_p2), %v1000_v3  ;;  %v352_v5 = vld [vmem:[%s1290_s1 + $0x8] sm:$0xff] (!%p290_p2)  ;;  %v355_v7 = vld [vmem:[%s1290_s1 + $0x20] sm:$0xff] (!%p290_p2)  ;;  %v358_v8 = vld [vmem:[%s1290_s1 + $0x38] sm:$0xff] (!%p290_p2)  ;;  %vm510_vm1 = vcmask (!%p290_p2), 523264   ;;  %vm628_vm2 = vcmask (!%p290_p2), 64512  }
   0x9   : > { %371 = vperm.xlu1 (!%p290_p2), %983, %v353_v1   ;;  %361 = vperm.xlu0 (!%p290_p2), %982, %v351_v2   ;;  %v356_v6 = vld [vmem:[%s1290_s1 + $0x28] sm:$0xff] (!%p290_p2)  ;;  %v357_v9 = vld [vmem:[%s1290_s1 + $0x30] sm:$0xff] (!%p290_p2)  ;;  %v441_v10 = vld [vmem:[#allocation2] sm:$0x1] (!%p290_p2)  ;;  %v447_v1 = vlaneseq (!%p290_p2)  ;;  %vm584_vm3 = vcmask (!%p290_p2), 7168  }
   0xd   : > { %376 = vperm.xlu1 (!%p290_p2), %983, %v354_v4   ;;  %366 = vperm.xlu0 (!%p290_p2), %982, %v352_v5  }
   0xf   : > { %s1300_s12 = smov (!%p325_p3, %s885_s12), 1 }
  0x10   : > { %s905_s28 = sshll.u32 %s1300_s12, 7 }
  0x11   : > { %386 = vperm.xlu1 %983, %v356_v6   ;;  %381 = vperm.xlu0 %982, %v355_v7   ;;  %s1097_s10 = scalar_lea.vmem %s1289_s0, %s905_s28  ;;  %v448_v6 = vshrl.u32 %v447_v1, 7  ;;  %s1252_s16 = scalar_lea.vmem %s1298_s9, %s905_s28 }
  0x12   : > { %v1100_v13 = vld [vmem:[%s1097_s10] sm:$0xff]  ;;  %v1103_v14 = vld [vmem:[%s1097_s10 + $0x8] sm:$0xff]  ;;  %v1106_v15 = vld [vmem:[%s1097_s10 + $0x10] sm:$0xff] }
  0x13   : > { %v1109_v16 = vld [vmem:[%s1097_s10 + $0x18] sm:$0xff]  ;;  %v1112_v17 = vld [vmem:[%s1097_s10 + $0x20] sm:$0xff]  ;;  %v1115_v18 = vld [vmem:[%s1097_s10 + $0x28] sm:$0xff] }
  0x14   : > { %v1122_v25 = vld [vmem:[%s1097_s10 + $0x30] sm:$0xff]  ;;  %v1125_v26 = vld [vmem:[%s1097_s10 + $0x38] sm:$0xff]  ;;  %v1130_v33 = vld [vmem:[%s1097_s10 + $0x40] sm:$0xff] }
  0x15   : > { %396 = vperm.xlu1 %983, %v358_v8   ;;  %391 = vperm.xlu0 %982, %v357_v9   ;;  %v1133_v34 = vld [vmem:[%s1097_s10 + $0x48] sm:$0xff]  ;;  %v1138_v39 = vld [vmem:[%s1097_s10 + $0x50] sm:$0xff]  ;;  %v1141_v40 = vld [vmem:[%s1097_s10 + $0x58] sm:$0xff]  ;;  %v449_v9 = vsub.s32 0, %v448_v6 }
  0x16   : > { %v1146_v46 = vld [vmem:[%s1097_s10 + $0x60] sm:$0xff]  ;;  %v1149_v47 = vld [vmem:[%s1097_s10 + $0x68] sm:$0xff]  ;;  %v1154_v53 = vld [vmem:[%s1097_s10 + $0x70] sm:$0xff] }
  0x17   : > { %v1157_v54 = vld [vmem:[%s1097_s10 + $0x78] sm:$0xff] }
  0x19   : > { %444 = vperm.xlu0 %982, %v441_v10  }
  0x88   : > { %v372_v11 = vpop.permute.xlu1 %371  ;;  %v362_v12 = vpop.permute.xlu0 %361 }
  0x89   : > { %v399_v21 = vmul.f32 %v362_v12, %v1100_v13  ;;  %v400_v22 = vmul.f32 %v362_v12, %v1103_v14  ;;  %v403_v27 = vmul.f32 %v372_v11, %v1112_v17  ;;  %v404_v28 = vmul.f32 %v372_v11, %v1115_v18 }
  0x8c   : > { %v377_v19 = vpop.permute.xlu1 %376  ;;  %v367_v20 = vpop.permute.xlu0 %366 }
  0x8d   : > { %v401_v23 = vmul.f32 %v367_v20, %v1106_v15  ;;  %v402_v24 = vmul.f32 %v367_v20, %v1109_v16  ;;  %v405_v35 = vmul.f32 %v377_v19, %v1122_v25  ;;  %v406_v36 = vmul.f32 %v377_v19, %v1125_v26 }
  0x8f   : > { %v415_v29 = vadd.f32 %v401_v23, %v399_v21  ;;  %v428_v30 = vadd.f32 %v402_v24, %v400_v22 }
  0x90   : > { %v387_v31 = vpop.permute.xlu1 %386  ;;  %v382_v32 = vpop.permute.xlu0 %381 }
  0x91   : > { %v416_v37 = vadd.f32 %v415_v29, %v403_v27  ;;  %v429_v38 = vadd.f32 %v428_v30, %v404_v28  ;;  %v407_v41 = vmul.f32 %v382_v32, %v1130_v33  ;;  %v408_v42 = vmul.f32 %v382_v32, %v1133_v34 }
  0x92   : > { %v409_v48 = vmul.f32 %v387_v31, %v1138_v39  ;;  %v410_v49 = vmul.f32 %v387_v31, %v1141_v40 }
  0x93   : > { %v417_v43 = vadd.f32 %v416_v37, %v405_v35  ;;  %v430_v44 = vadd.f32 %v429_v38, %v406_v36 }
  0x94   : > { %v392_v45 = vpop.permute.xlu0 %391  ;;  %v397_v52 = vpop.permute.xlu1 %396 }
  0x95   : > { %v418_v50 = vadd.f32 %v417_v43, %v407_v41  ;;  %v431_v51 = vadd.f32 %v430_v44, %v408_v42  ;;  %v411_v55 = vmul.f32 %v392_v45, %v1146_v46  ;;  %v412_v56 = vmul.f32 %v392_v45, %v1149_v47 }
  0x96   : > { %v413_v59 = vmul.f32 %v397_v52, %v1154_v53  ;;  %v414_v60 = vmul.f32 %v397_v52, %v1157_v54 }
  0x97   : > { %v419_v57 = vadd.f32 %v418_v50, %v409_v48  ;;  %v432_v58 = vadd.f32 %v431_v51, %v410_v49 }
  0x98   : > { %v445_v12 = vpop.permute.xlu0 %444 }
  0x99   : > { %v420_v61 = vadd.f32 %v419_v57, %v411_v55  ;;  %v433_v62 = vadd.f32 %v432_v58, %v412_v56  ;;  %v450_v23 = vrot.slane %v445_v12, %v449_v9  ;;  %v1001_v9 = vmov 0.0|0.0  }
  0x9a   : > { %958 = vmatprep.subr.bf16.mxu0 %v1001_v9 }
  0x9b   : > { %v421_v63 = vadd.f32 %v420_v61, %v413_v59  ;;  %v434_v0 = vadd.f32 %v433_v62, %v414_v60 }
  0x9d   : > { %v422_v2 = vrot.slane %v421_v63, 4  ;;  %v435_v3 = vrot.slane %v434_v0, 4 }
  0x9f   : > { %v423_v4 = vadd.f32 %v422_v2, %v421_v63  ;;  %v436_v5 = vadd.f32 %v435_v3, %v434_v0 }
  0xa1   : > { %v424_v7 = vrot.slane %v423_v4, 2  ;;  %v437_v8 = vrot.slane %v436_v5, 2 }
  0xa3   : > { %v425_v10 = vadd.f32 %v424_v7, %v423_v4  ;;  %v438_v11 = vadd.f32 %v437_v8, %v436_v5 }
  0xa5   : > { %v426_v19 = vrot.slane %v425_v10, 1  ;;  %v439_v20 = vrot.slane %v438_v11, 1 }
  0xa7   : > { %v427_v21 = vadd.f32 %v426_v19, %v425_v10  ;;  %v440_v22 = vadd.f32 %v439_v20, %v438_v11  ;;  %v1003_v10 = vmov 0.0  }
  0xa8   : > { %941 = vmatprep.mubr.msk.f32.mxu0 %vm1002_vm0, %v1003_v10  ;;  %v616_v10 = vld [vmem:[%s1296_s7 + $0x20] sm:$0xff] }
  0xa9   : > { %v451_v24 = vadd.f32 %v450_v23, %v427_v21  ;;  %v452_v27 = vadd.f32 %v450_v23, %v440_v22 }
  0xab   : > { %v453_v28 = vmax.f32 %v451_v24, %v452_v27 }
  0xad   : > { %454 = vmax.xlane.f32.xlu1 %v453_v28 }
 0x13a   : > { %v455_v29 = vpop.xlane.xlu1 %454 }
 0x13b   : > { %v456_v30 = vsub.f32 %v451_v24, %v455_v29  ;;  %v457_v31 = vsub.f32 %v452_v27, %v455_v29 }
 0x13d   : > { %v458_v32 = vmul.f32 1.442695, %v456_v30  ;;  %v460_v35 = vmul.f32 1.442695, %v457_v31  ;;  %v508_v31 = vld [vmem:[%s1292_s3] sm:$0xff] }
 0x13f   : > { %984 = vpow2.f32 %v458_v32  ;;  %v612_v32 = vld [vmem:[%s1296_s7] sm:$0xff] }
 0x140   : > { %986 = vpow2.f32 %v460_v35  ;;  %946 = vmatprep.mubr.msk.f32.mxu1 %vm628_vm2, %v612_v32  ;;  %v509_v35 = vld [vmem:[%s1293_s4] sm:$0xff] }
 0x149   : > { %v985_v36 = vpop.eup %984 }
 0x14a   : > { %v987_v37 = vpop.eup %986 }
 0x14b   : > { %v462_v38 = vadd.f32 %v987_v37, %v985_v36 }
 0x14d   : > { %463 = vadd.xlane.f32.xlu0 %v462_v38 }
 0x1da   : > { %v464_v41 = vpop.xlane.xlu0 %463 }
 0x1db   : > { %988 = vrcp.f32 %v464_v41 }
 0x1e5   : > { %v989_v42 = vpop.eup %988 }
 0x1e6   : > { %v466_v43 = vmul.f32 %v989_v42, %v985_v36  ;;  %v467_v44 = vmul.f32 %v989_v42, %v987_v37 }
 0x1e8   : > { %v470_v45 = vmul.f32 %v466_v43, %v1106_v15  ;;  %v471_v48 = vmul.f32 %v467_v44, %v1109_v16  ;;  %v468_v49 = vmul.f32 %v466_v43, %v1100_v13  ;;  %v469_v50 = vmul.f32 %v467_v44, %v1103_v14 }
 0x1e9   : > { %v474_v51 = vmul.f32 %v466_v43, %v1122_v25  ;;  %v475_v52 = vmul.f32 %v467_v44, %v1125_v26  ;;  %v472_v57 = vmul.f32 %v466_v43, %v1112_v17  ;;  %v473_v58 = vmul.f32 %v467_v44, %v1115_v18 }
 0x1ea   : > { %v487_v55 = vadd.f32 %v471_v48, %v470_v45  ;;  %v484_v56 = vadd.f32 %v469_v50, %v468_v49  ;;  %v478_v59 = vmul.f32 %v466_v43, %v1138_v39  ;;  %v479_v60 = vmul.f32 %v467_v44, %v1141_v40 }
 0x1eb   : > { %v493_v61 = vadd.f32 %v475_v52, %v474_v51  ;;  %v490_v62 = vadd.f32 %v473_v58, %v472_v57  ;;  %v476_v63 = vmul.f32 %v466_v43, %v1130_v33  ;;  %v477_v0 = vmul.f32 %v467_v44, %v1133_v34 }
 0x1ec   : > { %488 = vadd.xlane.f32.xlu1 %v487_v55  ;;  %485 = vadd.xlane.f32.xlu0 %v484_v56  ;;  %v499_v1 = vadd.f32 %v479_v60, %v478_v59  ;;  %v482_v2 = vmul.f32 %v466_v43, %v1154_v53  ;;  %v483_v4 = vmul.f32 %v467_v44, %v1157_v54 }
 0x1ed   : > { %v496_v3 = vadd.f32 %v477_v0, %v476_v63  ;;  %v480_v5 = vmul.f32 %v466_v43, %v1146_v46  ;;  %v481_v6 = vmul.f32 %v467_v44, %v1149_v47 }
 0x1ee   : > { %v505_v7 = vadd.f32 %v483_v4, %v482_v2 }
 0x1ef   : > { %v502_v8 = vadd.f32 %v481_v6, %v480_v5 }
 0x1f0   : > { %494 = vadd.xlane.f32.xlu1 %v493_v61  ;;  %491 = vadd.xlane.f32.xlu0 %v490_v62 }
 0x1f4   : > { %500 = vadd.xlane.f32.xlu1 %v499_v1  ;;  %497 = vadd.xlane.f32.xlu0 %v496_v3  ;;  %v607_v1 = vld [vmem:[%s1294_s5] sm:$0xff] }
 0x1f5   : > { %v609_v3 = vld [vmem:[%s1295_s6] sm:$0xff] }
 0x1f8   : > { %506 = vadd.xlane.f32.xlu1 %v505_v7  ;;  %503 = vadd.xlane.f32.xlu0 %v502_v8  ;;  %v613_v7 = vld [vmem:[%s1296_s7 + $0x8] sm:$0xff]  ;;  %v614_v8 = vld [vmem:[%s1296_s7 + $0x10] sm:$0xff] }
 0x279   : > { %v489_v11 = vpop.xlane.xlu1 %488  ;;  %v486_v12 = vpop.xlane.xlu0 %485 }
 0x27a   : > { %v959_v19 = vpack.c.bf16 %v489_v11, %v486_v12  ;;  %v617_v11 = vld [vmem:[%s1296_s7 + $0x28] sm:$0xff]  ;;  %v618_v12 = vld [vmem:[%s1296_s7 + $0x30] sm:$0xff] }
 0x27c   : > { %960 = vmatpush3.bf16.msra.mxu0 %v959_v19  ;;  %v619_v19 = vld [vmem:[%s1296_s7 + $0x38] sm:$0xff] }
 0x27d   : > { %v495_v20 = vpop.xlane.xlu1 %494  ;;  %v492_v21 = vpop.xlane.xlu0 %491  ;;  %961 = vmatprep.subr.bf16.mxu0 %v1001_v9 }
 0x27e   : > { %v962_v22 = vpack.c.bf16 %v495_v20, %v492_v21  ;;  %v621_v20 = vld [vmem:[%s1297_s8 + $0x8] sm:$0xff]  ;;  %v620_v21 = vld [vmem:[%s1297_s8] sm:$0xff] }
 0x280   : > { %963 = vmatpush3.bf16.msra.mxu0 %v962_v22 }
 0x281   : > { %v501_v23 = vpop.xlane.xlu1 %500  ;;  %v498_v24 = vpop.xlane.xlu0 %497  ;;  %964 = vmatprep.subr.bf16.mxu0 %v1001_v9 }
 0x282   : > { %v965_v27 = vpack.c.bf16 %v501_v23, %v498_v24 }
 0x284   : > { %966 = vmatpush3.bf16.msra.mxu0 %v965_v27 }
 0x285   : > { %v507_v28 = vpop.xlane.xlu1 %506  ;;  %v504_v29 = vpop.xlane.xlu0 %503  ;;  %967 = vmatprep.subr.bf16.mxu0 %v1001_v9  ;;  %v615_v9 = vld [vmem:[%s1296_s7 + $0x18] sm:$0xff] }
 0x286   : > { %v968_v30 = vpack.c.bf16 %v507_v28, %v504_v29  ;;  %v623_v28 = vld [vmem:[%s1297_s8 + $0x18] sm:$0xff]  ;;  %v622_v29 = vld [vmem:[%s1297_s8 + $0x10] sm:$0xff] }
 0x288   : > { %969 = vmatpush3.bf16.msra.mxu0 %v968_v30 }
 0x28b   : > { %942 = vmatmul.mubr.msk.f32.vlgmr.msra.gmra.mrb[0].mxu0 %vm510_vm1, %v508_v31 }
 0x35e   : > { %v580_v36 = vpop.f32.mrb[0].mxu0 }
 0x35f   : > { %v581_v37 = vadd.f32 %v580_v36, %v509_v35  ;;  %v943_v38 = vpop.f32.mrb[1].mxu0  ;;  %v625_v36 = vld [vmem:[%s1297_s8 + $0x28] sm:$0xff] }
 0x361   : > { %v585_v41 = vsel %vm584_vm3, %v581_v37, 0.0 }
 0x362   : > { %v586_v42 = vrot.slane %v585_v41, 4 }
 0x364   : > { %v587_v43 = vadd.f32 %v586_v42, %v585_v41 }
 0x366   : > { %v588_v44 = vrot.slane %v587_v43, 2 }
 0x368   : > { %v589_v45 = vadd.f32 %v588_v44, %v587_v43  ;;  %v627_v44 = vld [vmem:[%s1297_s8 + $0x38] sm:$0xff] }
 0x36a   : > { %v590_v48 = vrot.slane %v589_v45, 1 }
 0x36c   : > { %v591_v49 = vadd.f32 %v590_v48, %v589_v45  ;;  %v626_v45 = vld [vmem:[%s1297_s8 + $0x30] sm:$0xff] }
 0x36e   : > { %v593_v50 = vmul.f32 0.125, %v591_v49 }
 0x370   : > { %v594_v51 = vsub.f32 %v581_v37, %v593_v50  ;;  %v624_v37 = vld [vmem:[%s1297_s8 + $0x20] sm:$0xff] }
 0x372   : > { %v595_v52 = vmul.f32 %v594_v51, %v594_v51 }
 0x374   : > { %v596_v55 = vsel %vm584_vm3, %v595_v52, 0.0 }
 0x375   : > { %v597_v56 = vrot.slane %v596_v55, 4 }
 0x377   : > { %v598_v57 = vadd.f32 %v597_v56, %v596_v55 }
 0x379   : > { %v599_v58 = vrot.slane %v598_v57, 2 }
 0x37b   : > { %v600_v59 = vadd.f32 %v599_v58, %v598_v57 }
 0x37d   : > { %v601_v60 = vrot.slane %v600_v59, 1 }
 0x37f   : > { %v602_v61 = vadd.f32 %v601_v60, %v600_v59 }
 0x381   : > { %v603_v62 = vmul.f32 0.125, %v602_v61 }
 0x383   : > { %v604_v63 = vadd.f32 1e-05, %v603_v62 }
 0x385   : > { %990 = vrsqrt.f32 %v604_v63 }
 0x38f   : > { %v991_v0 = vpop.eup %990 }
 0x390   : > { %v606_v2 = vmul.f32 %v991_v0, %v594_v51 }
 0x392   : > { %v608_v4 = vmul.f32 %v607_v1, %v606_v2 }
 0x394   : > { %v610_v5 = vadd.f32 %v609_v3, %v608_v4 }
 0x396   : > { %v611_v6 = vmax.f32 %v610_v5, 0.0 }
 0x398   : > { %944 = vmatprep.subr.mxu1 %v611_v6 }
 0x399   : > { %945 = vmatpush3.msra.mxu1 %v611_v6 }
 0x39a   : > { %947 = vmatmul.mubr.msk.f32.vlgmr.msra.gmra.mrb[0].mxu1 %vm628_vm2, %v613_v7 }
 0x39b   : > { %949 = vmatprep.mubr.msk.f32.mxu1 %vm628_vm2, %v614_v8 }
 0x39e   : > { %950 = vmatmul.mubr.msk.f32.gmra.mrb[2].mxu1 %vm628_vm2, %v615_v9 }
 0x39f   : > { %952 = vmatprep.mubr.msk.f32.mxu1 %vm628_vm2, %v616_v10 }
 0x3a2   : > { %953 = vmatmul.mubr.msk.f32.gmra.mrb[4].mxu1 %vm628_vm2, %v617_v11 }
 0x3a3   : > { %955 = vmatprep.mubr.msk.f32.mxu1 %vm628_vm2, %v618_v12 }
 0x3a6   : > { %956 = vmatmul.mubr.msk.f32.gmra.mrb[6].mxu1 %vm628_vm2, %v619_v19 }
 0x46d   : > { %v948_v22 = vpop.f32.mrb[0].mxu1 }
 0x46e   : > { %v725_v23 = vadd.f32 %v948_v22, %v621_v20  ;;  %v719_v24 = vpop.f32.mrb[1].mxu1 }
 0x46f   : > { %v720_v27 = vadd.f32 %v719_v24, %v620_v21 }
 0x470   : > { %765 = vperm.xlu1 %983, %v725_v23  }
 0x471   : > { %v951_v30 = vpop.f32.mrb[2].mxu1  ;;  %760 = vperm.xlu0 %982, %v720_v27  }
 0x472   : > { %v735_v31 = vadd.f32 %v951_v30, %v623_v28  ;;  %v729_v32 = vpop.f32.mrb[3].mxu1 }
 0x473   : > { %v730_v35 = vadd.f32 %v729_v32, %v622_v29 }
 0x475   : > { %v954_v38 = vpop.f32.mrb[4].mxu1  ;;  %770 = vperm.xlu1 %983, %v730_v35   ;;  %775 = vperm.xlu0 %982, %v735_v31  }
 0x476   : > { %v745_v41 = vadd.f32 %v954_v38, %v625_v36  ;;  %v739_v42 = vpop.f32.mrb[5].mxu1 }
 0x477   : > { %v740_v43 = vadd.f32 %v739_v42, %v624_v37 }
 0x479   : > { %v957_v48 = vpop.f32.mrb[6].mxu1  ;;  %780 = vperm.xlu1 %983, %v740_v43   ;;  %785 = vperm.xlu0 %982, %v745_v41  }
 0x47a   : > { %v755_v49 = vadd.f32 %v957_v48, %v627_v44  ;;  %v749_v50 = vpop.f32.mrb[7].mxu1 }
 0x47b   : > { %v750_v51 = vadd.f32 %v749_v50, %v626_v45 }
 0x47d   : > { %790 = vperm.xlu1 %983, %v750_v51   ;;  %795 = vperm.xlu0 %982, %v755_v49  }
 0x4ef   : > { %v766_v52 = vpop.permute.xlu1 %765 }
 0x4f0   : > { %v800_v55 = vadd.f32 %v766_v52, %v1106_v15  ;;  %v801_v56 = vadd.f32 %v766_v52, %v1109_v16  ;;  %v761_v57 = vpop.permute.xlu0 %760 }
 0x4f1   : > { %v798_v58 = vadd.f32 %v761_v57, %v1100_v13  ;;  %v799_v59 = vadd.f32 %v761_v57, %v1103_v14 }
 0x4f2   : > { %816 = vst [vmem:[%s1252_s16 + $0x10] sm:$0xff] %v800_v55  ;;  %817 = vst [vmem:[%s1252_s16 + $0x18] sm:$0xff] %v801_v56 }
 0x4f3   : > { %814 = vst [vmem:[%s1252_s16] sm:$0xff] %v798_v58  ;;  %815 = vst [vmem:[%s1252_s16 + $0x8] sm:$0xff] %v799_v59 }
 0x4f4   : > { %v771_v60 = vpop.permute.xlu1 %770  ;;  %v776_v61 = vpop.permute.xlu0 %775 }
 0x4f5   : > { %v802_v15 = vadd.f32 %v771_v60, %v1112_v17  ;;  %v803_v16 = vadd.f32 %v771_v60, %v1115_v18  ;;  %v804_v62 = vadd.f32 %v776_v61, %v1122_v25  ;;  %v805_v13 = vadd.f32 %v776_v61, %v1125_v26 }
 0x4f7   : > { %818 = vst [vmem:[%s1252_s16 + $0x20] sm:$0xff] %v802_v15  ;;  %819 = vst [vmem:[%s1252_s16 + $0x28] sm:$0xff] %v803_v16 }
 0x4f8   : > { %820 = vst [vmem:[%s1252_s16 + $0x30] sm:$0xff] %v804_v62  ;;  %821 = vst [vmem:[%s1252_s16 + $0x38] sm:$0xff] %v805_v13  ;;  %v781_v14 = vpop.permute.xlu1 %780  ;;  %v786_v63 = vpop.permute.xlu0 %785 }
 0x4f9   : > { %v806_v0 = vadd.f32 %v781_v14, %v1130_v33  ;;  %v807_v17 = vadd.f32 %v781_v14, %v1133_v34  ;;  %v808_v18 = vadd.f32 %v786_v63, %v1138_v39  ;;  %v809_v25 = vadd.f32 %v786_v63, %v1141_v40 }
 0x4fb   : > { %822 = vst [vmem:[%s1252_s16 + $0x40] sm:$0xff] %v806_v0  ;;  %823 = vst [vmem:[%s1252_s16 + $0x48] sm:$0xff] %v807_v17 }
 0x4fc   : > { %824 = vst [vmem:[%s1252_s16 + $0x50] sm:$0xff] %v808_v18  ;;  %825 = vst [vmem:[%s1252_s16 + $0x58] sm:$0xff] %v809_v25  ;;  %v791_v26 = vpop.permute.xlu1 %790  ;;  %v796_v1 = vpop.permute.xlu0 %795 }
 0x4fd   : > { %v810_v2 = vadd.f32 %v791_v26, %v1146_v46  ;;  %v811_v3 = vadd.f32 %v791_v26, %v1149_v47  ;;  %v812_v33 = vadd.f32 %v796_v1, %v1154_v53  ;;  %v813_v4 = vadd.f32 %v796_v1, %v1157_v54 }
 0x4ff   : > { %826 = vst [vmem:[%s1252_s16 + $0x60] sm:$0xff] %v810_v2  ;;  %827 = vst [vmem:[%s1252_s16 + $0x68] sm:$0xff] %v811_v3 }
 0x500   : > { %828 = vst [vmem:[%s1252_s16 + $0x70] sm:$0xff] %v812_v33  ;;  %829 = vst [vmem:[%s1252_s16 + $0x78] sm:$0xff] %v813_v4 }
 0x501 PF: > { %s21_s11 = sadd.s32 1, %s998_s11  }
 0x502   : > { %p18_p4 = scmp.ge.s32.totalorder %s21_s11, 4  }
 0x504   :  { %20 = sbr.rel (!%p18_p4) target bundleno = 3 (0x3), region = 86 }

</bundles_post_ra>
